<compile_context>
chip_gen: v7x
topology: tpu7x:2x2x1
jax: 0.10.0
libtpu: 0.0.40
codegen_flags: <defaults>
</compile_context>

<pallas_src>
import math
import functools

import jax
import jax.numpy as jnp
from jax.experimental import pallas as pl
from jax.experimental.pallas import tpu as pltpu


# ----------------------------------------------------------------------------
# Buffer setup (plain JAX glue — deterministic, matches nn.Module.__init__).
# ----------------------------------------------------------------------------
def make_pe_buffer(d_model: int, max_len: int) -> jnp.ndarray:
    position = jnp.arange(max_len, dtype=jnp.float32)[:, None]              # [L, 1]
    div_term = jnp.exp(
        jnp.arange(0, d_model, 2, dtype=jnp.float32) * (-math.log(10000.0) / d_model)
    )                                                                        # [D/2]
    angles = position * div_term                                             # [L, D/2]
    pe = jnp.zeros((max_len, 1, d_model), dtype=jnp.float32)
    pe = pe.at[:, 0, 0::2].set(jnp.sin(angles))
    pe = pe.at[:, 0, 1::2].set(jnp.cos(angles))
    return pe


# ----------------------------------------------------------------------------
# Pallas kernels
# ----------------------------------------------------------------------------
def _pe_add_kernel(x_ref, pe_ref, o_ref):
    # x_ref: (ts, B, D)    pe_ref: (ts, D)    o_ref: (ts, B, D)
    pe = pe_ref[...]                                     # f32 (ts, D)
    o_ref[...] = (x_ref[...] + pe[:, None, :]).astype(o_ref.dtype)


def _pe_add_dropout_kernel(seed_ref, x_ref, pe_ref, o_ref, *,
                           seq_tile: int, threshold: int, scale: float):
    # Training path: inverted dropout.  Counter-based hash PRNG keyed on
    # (seed, global element index) — tiling-independent and portable.
    # TODO(synk): RNG stream differs from torch's nn.Dropout (semantics match:
    #             keep-prob (1-p), scale 1/(1-p)).
    ts, B, D = x_ref.shape
    pe = pe_ref[...]                                     # (ts, D) f32
    y = x_ref[...] + pe[:, None, :]                      # f32 accumulate

    # Global linear element index (uint32, wraparound is fine for hashing).
    s_loc = jax.lax.broadcasted_iota(jnp.uint32, (ts, B, D), 0)
    b_idx = jax.lax.broadcasted_iota(jnp.uint32, (ts, B, D), 1)
    d_idx = jax.lax.broadcasted_iota(jnp.uint32, (ts, B, D), 2)
    s_glb = s_loc + (pl.program_id(0) * seq_tile).astype(jnp.uint32)
    lin = (s_glb * jnp.uint32(B) + b_idx) * jnp.uint32(D) + d_idx

    # murmur3-style finalizer mixed with the seed.
    z = lin ^ (seed_ref[0].astype(jnp.uint32) * jnp.uint32(0x9E3779B9))
    z = (z ^ (z >> 16)) * jnp.uint32(0x85EBCA6B)
    z = (z ^ (z >> 13)) * jnp.uint32(0xC2B2AE35)
    z = z ^ (z >> 16)

    keep = z >= jnp.uint32(threshold)                    # P(keep) = 1 - p
    o_ref[...] = (y * jnp.where(keep, jnp.float32(scale),
                                jnp.float32(0.0))).astype(o_ref.dtype)


# ----------------------------------------------------------------------------
# Tile selection: largest seq tile whose x block is <= target_block_bytes
# (default 2 MiB).  Small inputs collapse to a single block (grid = 1); no
# divisor requirement — the tail block is ragged and Pallas pads/masks it.
# Double-buffered in+out at 2 MiB blocks (~9 MiB) fits every generation's
# default scoped-VMEM limit (16 MiB v5e, 32 MiB v6e/v7x).
# ----------------------------------------------------------------------------
def _choose_seq_tile(S: int, B: int, D: int, itemsize: int,
                     target_block_bytes: int = 2 << 20) -> int:
    bytes_per_row = max(1, B * D * itemsize)
    cap = max(1, target_block_bytes // bytes_per_row)
    return max(1, min(cap, S))


# ----------------------------------------------------------------------------
# Wrapper
# ----------------------------------------------------------------------------
def positional_encoding_forward(
    x: jnp.ndarray,
    pe: jnp.ndarray,
    *,
    p: float = 0.1,
    training: bool = False,
    seed: int = 0,
    seq_tile: int | None = None,
    target_block_bytes: int = 2 << 20,
) -> jnp.ndarray:
    """x: [S, B, D]; pe: [max_len, 1, D] float32 (as in the PyTorch module)."""
    S, B, D = x.shape
    max_len = pe.shape[0]
    assert pe.shape == (max_len, 1, D), f"pe shape {pe.shape} != ({max_len},1,{D})"
    assert max_len >= S, "sequence longer than positional-encoding buffer"

    ts = seq_tile if seq_tile is not None else _choose_seq_tile(
        S, B, D, jnp.dtype(x.dtype).itemsize, target_block_bytes)
    ts = max(1, min(ts, S))
    grid = (pl.cdiv(S, ts),)

    x_spec = pl.BlockSpec((ts, B, D), lambda i: (i, 0, 0))
    # pe fed as the original [max_len, 1, D] buffer; the size-1 batch dim is
    # squeezed (block dim None) so the kernel sees a dense (ts, D) tile.
    pe_spec = pl.BlockSpec((ts, None, D), lambda i: (i, 0, 0))
    out_spec = pl.BlockSpec((ts, B, D), lambda i: (i, 0, 0))
    out_shape = jax.ShapeDtypeStruct((S, B, D), x.dtype)
    cparams = pltpu.CompilerParams(dimension_semantics=("parallel",))

    if (not training) or p == 0.0:
        return pl.pallas_call(
            _pe_add_kernel,
            out_shape=out_shape,
            grid=grid,
            in_specs=[x_spec, pe_spec],
            out_specs=out_spec,
            compiler_params=cparams,
        )(x, pe)

    assert 0.0 <= p < 1.0, f"dropout p must be in [0, 1), got {p}"
    # Integer dropout threshold: drop iff hash bits < round(p * 2^32).
    threshold = min(int(round(p * 4294967296.0)), 4294967295)
    scale = 1.0 / (1.0 - p)
    seed_arr = jnp.array([seed], dtype=jnp.int32)
    return pl.pallas_call(
        functools.partial(_pe_add_dropout_kernel,
                          seq_tile=ts, threshold=threshold, scale=scale),
        out_shape=out_shape,
        grid=grid,
        in_specs=[
            pl.BlockSpec(memory_space=pltpu.MemorySpace.SMEM),   # seed scalar
            x_spec,
            pe_spec,
        ],
        out_specs=out_spec,
        compiler_params=cparams,
    )(seed_arr, x, pe)


# ----------------------------------------------------------------------------
# Main
# ----------------------------------------------------------------------------
if __name__ == "__main__":
    # Small but lane/sublane-aligned demo shapes: B % 8 == 0, D % 128 == 0.
    S, B, D = 16, 8, 128
    MAX_LEN = 64

    key = jax.random.PRNGKey(0)
    x = jax.random.normal(key, (S, B, D), dtype=jnp.float32)
    pe = make_pe_buffer(D, MAX_LEN)
    ref = x + pe[:S]                                      # pure-JAX reference

    # Eval mode (Dropout is identity): exact check. Auto tile -> single block.
    out = jax.block_until_ready(
        positional_encoding_forward(x, pe, p=0.1, training=False))
    assert out.shape == (S, B, D)
    assert jnp.allclose(out, ref, atol=1e-6), "eval-mode mismatch vs reference"

    # Training mode: every element is either 0 or (x+pe)/(1-p), drop rate ~ p.
    p = 0.1
    out_tr = jax.block_until_ready(
        positional_encoding_forward(x, pe, p=p, training=True, seed=1234))
    scaled = ref / (1.0 - p)
    dropped = (out_tr == 0.0)
    ok_vals = dropped | jnp.isclose(out_tr, scaled, atol=1e-5, rtol=1e-5)
    assert bool(jnp.all(ok_vals)), "training-mode values are not {0, scaled}"
    drop_rate = float(jnp.mean(dropped.astype(jnp.float32)))
    assert 0.01 < drop_rate < 0.30, f"unexpected drop rate {drop_rate}"

    # Tiling-independence of the dropout mask: force a different seq tile.
    out_tr2 = jax.block_until_ready(
        positional_encoding_forward(x, pe, p=p, training=True, seed=1234,
                                    seq_tile=4))
    assert jnp.allclose(out_tr, out_tr2), "dropout mask depends on tiling"

    print("KERNEL_OK")
</pallas_src>

<mosaic_0001>
module attributes {stable_mosaic.version = 11 : i64} {
  func.func @_pe_add_kernel(%arg0: i32, %arg1: memref<16x8x128xf32, #tpu.memory_space<vmem>>, %arg2: memref<16x1x128xf32, #tpu.memory_space<vmem>>, %arg3: memref<16x8x128xf32, #tpu.memory_space<vmem>>) attributes {dimension_semantics = [#tpu.dimension_semantics<parallel>], iteration_bounds = array<i64: 1>, scalar_prefetch = 0 : i64, scratch_operands = 0 : i64, tpu.core_type = #tpu.core_type<tc>, window_params = [{transform_indices = @transform_0, window_bounds = array<i64: 16, 8, 128>}, {transform_indices = @transform_1, window_bounds = array<i64: 16, 1, 128>}, {transform_indices = @transform_2, window_bounds = array<i64: 16, 8, 128>}]} {
    %c0 = arith.constant 0 : index
    %c0_0 = arith.constant 0 : index
    %c0_1 = arith.constant 0 : index
    %0 = vector.load %arg2[%c0, %c0_0, %c0_1] : memref<16x1x128xf32, #tpu.memory_space<vmem>>, vector<16x1x128xf32>
    %1 = vector.shape_cast %0 : vector<16x1x128xf32> to vector<16x128xf32>
    %c0_2 = arith.constant 0 : index
    %c0_3 = arith.constant 0 : index
    %c0_4 = arith.constant 0 : index
    %2 = vector.load %arg1[%c0_2, %c0_3, %c0_4] : memref<16x8x128xf32, #tpu.memory_space<vmem>>, vector<16x8x128xf32>
    %3 = vector.shape_cast %1 : vector<16x128xf32> to vector<16x1x128xf32>
    %4 = vector.broadcast %3 : vector<16x1x128xf32> to vector<16x8x128xf32>
    %5 = arith.addf %2, %4 : vector<16x8x128xf32>
    %c0_5 = arith.constant 0 : index
    %c0_6 = arith.constant 0 : index
    %c0_7 = arith.constant 0 : index
    %6 = vector.load %arg3[%c0_5, %c0_6, %c0_7] : memref<16x8x128xf32, #tpu.memory_space<vmem>>, vector<16x8x128xf32>
    tpu.vector_store %arg3[%c0_5, %c0_6, %c0_7], %5 {strides = array<i32>} : memref<16x8x128xf32, #tpu.memory_space<vmem>>, vector<16x8x128xf32>,
    return
  }
  func.func @transform_0(%arg0: i32) -> (i32, i32, i32) {
    %c0_i32 = arith.constant 0 : i32
    %c0_i32_0 = arith.constant 0 : i32
    %c0_i32_1 = arith.constant 0 : i32
    return %arg0, %c0_i32, %c0_i32_0 : i32, i32, i32
  }
  func.func @transform_1(%arg0: i32) -> (i32, i32, i32) {
    %c0_i32 = arith.constant 0 : i32
    %c0_i32_0 = arith.constant 0 : i32
    %c0_i32_1 = arith.constant 0 : i32
    return %arg0, %c0_i32, %c0_i32_0 : i32, i32, i32
  }
  func.func @transform_2(%arg0: i32) -> (i32, i32, i32) {
    %c0_i32 = arith.constant 0 : i32
    %c0_i32_0 = arith.constant 0 : i32
    %c0_i32_1 = arith.constant 0 : i32
    return %arg0, %c0_i32, %c0_i32_0 : i32, i32, i32
  }
}

</mosaic_0001>

<bundles_post_ra>
// kernel: tpu_custom_call.1
= control target key start
LH: loop header
LB: loop body
LE: loop exit
PB: predicated region body
PF: predicated region fallthrough
CT: control target
= control target key end

     0   :  { %7 = vsyncpa [#allocation3], 0  ;;  %s380_s0 = inlined_call_operand.hbm [shape: f32[16,8,128], index: 0, kind: input, shape index: {}]   ;;  %s381_s1 = inlined_call_operand.hbm [shape: f32[64,1,128], index: 1, kind: input, shape index: {}]   ;;  %s382_s2 = inlined_call_operand.hbm [shape: f32[16,8,128], index: 2, kind: output, shape index: {}]  }
   0x1   :  { %8 = vsyncpa [#allocation6], 0 }
   0x2   :  { %9 = vsyncpa [#allocation4], 0  ;;  %s313_s9 = smov [#allocation2]   ;;  %s241_s13 = scalar_lea.hbm %s380_s0, 2048 }
   0x3   :  { %s15_s10 = sshll.u32 %s313_s9, 4  ;;  %p242_p0 = scmp.ne.s32.totalorder %s380_s0, %s241_s13  ;;  %s16_s10 = int_to_ptr.vmem [resolvable:$true] %s15_s10 }
   0x4   :  { %p245_p1 = scmp.lt.u32.totalorder %s241_s13, %s380_s0 }
   0x6   :  { %p247_p2 = pnand %p245_p1, %p242_p0 }
   0x8   :  { %250 = shalt.err (!%p247_p2)
}
   0x9   :  { %s251_s18 = scalar_lea.vmem %s16_s10, 2048  ;;  %p256_p4 = scmp.lt.s32.totalorder %s16_s10, %s16_s10 }
   0xa   :  { %p252_p3 = scmp.ne.s32.totalorder %s16_s10, %s251_s18  ;;  %p257_p5 = scmp.lt.s32.totalorder %s251_s18, %s251_s18 }
   0xc   :  { %p258_p6 = por %p257_p5, %p256_p4 }
   0xe   :  { %p259_p7 = pnand %p258_p6, %p252_p3 }
  0x10   :  { %262 = shalt.err (!%p259_p7)
}
  0x11   :  { %s314_s19 = smov 128   ;;  %s315_s20 = smov 8  }
  0x12   :  { %21 = dma.hbm_to_vmem [thread:$0]  %s380_s0, 2048, %s16_s10, [#allocation3], %s314_s19, %s314_s19, %s315_s20  }
  0x13   :  { %s316_s23 = smov [#allocation5]   ;;  %s263_s27 = scalar_lea.hbm %s381_s1, 256 }
  0x14   :  { %s27_s24 = sshll.u32 %s316_s23, 4  ;;  %p264_p8 = scmp.ne.s32.totalorder %s381_s1, %s263_s27  ;;  %s28_s24 = int_to_ptr.vmem [resolvable:$true] %s27_s24 }
  0x15   :  { %s265_s4 = scalar_lea.hbm %s381_s1, 1024  ;;  %p267_p10 = scmp.lt.u32.totalorder %s263_s27, %s381_s1 }
  0x16   :  { %p266_p9 = scmp.lt.u32.totalorder %s265_s4, %s263_s27 }
  0x18   :  { %p268_p11 = por %p267_p10, %p266_p9 }
  0x1a   :  { %p269_p12 = pnand %p268_p11, %p264_p8 }
  0x1c   :  { %272 = shalt.err (!%p269_p12)
}
  0x1d   :  { %s273_s0 = scalar_lea.vmem %s28_s24, 256  ;;  %p278_p0 = scmp.lt.s32.totalorder %s28_s24, %s28_s24 }
  0x1e   :  { %p274_p13 = scmp.ne.s32.totalorder %s28_s24, %s273_s0  ;;  %p279_p1 = scmp.lt.s32.totalorder %s273_s0, %s273_s0 }
  0x20   :  { %p280_p2 = por %p279_p1, %p278_p0 }
  0x22   :  { %p281_p3 = pnand %p280_p2, %p274_p13 }
  0x24   :  { %284 = shalt.err (!%p281_p3)
}
  0x25   :  { %s317_s7 = smov 16   ;;  %s318_s8 = smov 1  }
  0x26   :  { %33 = dma.hbm_to_vmem [thread:$0]  %s381_s1, 256, %s28_s24, [#allocation6], %s317_s7, %s317_s7, %s318_s8  }
  0x27   :  { %307 = dma.done.wait [#allocation3], 2048  }
  0x28   :  { %308 = vsyncadd [#allocation3], 4294965248 }
  0x29   :  { %309 = dma.done.wait [#allocation6], 256  }
  0x2a   :  { %310 = vsyncadd [#allocation6], 4294967040  ;;  %v218_v0 = vld [vmem:[#allocation5] ss:$0 sm:$0xff]  ;;  %v219_v2 = vld [vmem:[#allocation5 + $0x1] ss:$0 sm:$0xff] }
  0x2b   :  { %v56_v1 = vld [vmem:[#allocation2] sm:$0xff]  ;;  %v57_v4 = vld [vmem:[#allocation2 + $0x8] sm:$0xff]  ;;  %v58_v6 = vld [vmem:[#allocation2 + $0x10] sm:$0xff]  ;;  %s319_s1 = smov [#allocation7]  }
  0x2c   :  { %v168_v3 = vadd.f32 %v218_v0, %v56_v1  ;;  %v220_v5 = vld [vmem:[#allocation5 + $0x2] ss:$0 sm:$0xff]  ;;  %v169_v7 = vadd.f32 %v219_v2, %v57_v4  ;;  %v221_v9 = vld [vmem:[#allocation5 + $0x3] ss:$0 sm:$0xff]  ;;  %v59_v10 = vld [vmem:[#allocation2 + $0x18] sm:$0xff]  ;;  %s205_s11 = sshll.u32 %s319_s1, 4  ;;  %s206_s11 = int_to_ptr.vmem [resolvable:$true] %s205_s11 }
  0x2d   :  { %v170_v8 = vadd.f32 %v220_v5, %v58_v6  ;;  %v222_v11 = vld [vmem:[#allocation5 + $0x4] ss:$0 sm:$0xff]  ;;  %v171_v12 = vadd.f32 %v221_v9, %v59_v10  ;;  %v223_v14 = vld [vmem:[#allocation5 + $0x5] ss:$0 sm:$0xff]  ;;  %v61_v15 = vld [vmem:[#allocation2 + $0x28] sm:$0xff]  ;;  %s285_s12 = scalar_lea.vmem %s206_s11, 2048  ;;  %p290_p5 = scmp.lt.s32.totalorder %s206_s11, %s206_s11 }
  0x2e   :  { %184 = vst [vmem:[#allocation7] sm:$0xff] %v168_v3  ;;  %v60_v13 = vld [vmem:[#allocation2 + $0x20] sm:$0xff]  ;;  %185 = vst [vmem:[#allocation7 + $0x8] sm:$0xff] %v169_v7  ;;  %v173_v17 = vadd.f32 %v223_v14, %v61_v15  ;;  %v62_v19 = vld [vmem:[#allocation2 + $0x30] sm:$0xff]  ;;  %p286_p4 = scmp.ne.s32.totalorder %s206_s11, %s285_s12  ;;  %p291_p6 = scmp.lt.s32.totalorder %s285_s12, %s285_s12 }
  0x2f   :  { %186 = vst [vmem:[#allocation7 + $0x10] sm:$0xff] %v170_v8  ;;  %v172_v16 = vadd.f32 %v222_v11, %v60_v13  ;;  %v224_v18 = vld [vmem:[#allocation5 + $0x6] ss:$0 sm:$0xff]  ;;  %v225_v20 = vld [vmem:[#allocation5 + $0x7] ss:$0 sm:$0xff]  ;;  %187 = vst [vmem:[#allocation7 + $0x18] sm:$0xff] %v171_v12 }
  0x30   :  { %v174_v21 = vadd.f32 %v224_v18, %v62_v19  ;;  %v63_v22 = vld [vmem:[#allocation2 + $0x38] sm:$0xff]  ;;  %v226_v23 = vld [vmem:[#allocation5 + $0x8] ss:$0 sm:$0xff]  ;;  %v64_v24 = vld [vmem:[#allocation2 + $0x40] sm:$0xff]  ;;  %189 = vst [vmem:[#allocation7 + $0x28] sm:$0xff] %v173_v17  ;;  %p292_p7 = por %p291_p6, %p290_p5 }
  0x31   :  { %188 = vst [vmem:[#allocation7 + $0x20] sm:$0xff] %v172_v16  ;;  %v175_v25 = vadd.f32 %v225_v20, %v63_v22  ;;  %v176_v26 = vadd.f32 %v226_v23, %v64_v24  ;;  %v227_v27 = vld [vmem:[#allocation5 + $0x9] ss:$0 sm:$0xff]  ;;  %v228_v29 = vld [vmem:[#allocation5 + $0xa] ss:$0 sm:$0xff]  ;;  %v66_v31 = vld [vmem:[#allocation2 + $0x50] sm:$0xff] }
  0x32   :  { %v65_v28 = vld [vmem:[#allocation2 + $0x48] sm:$0xff]  ;;  %190 = vst [vmem:[#allocation7 + $0x30] sm:$0xff] %v174_v21  ;;  %v67_v33 = vld [vmem:[#allocation2 + $0x58] sm:$0xff]  ;;  %v178_v34 = vadd.f32 %v228_v29, %v66_v31  ;;  %v68_v37 = vld [vmem:[#allocation2 + $0x60] sm:$0xff]  ;;  %p293_p8 = pnand %p292_p7, %p286_p4 }
  0x33   :  { %v177_v30 = vadd.f32 %v227_v27, %v65_v28  ;;  %v229_v32 = vld [vmem:[#allocation5 + $0xb] ss:$0 sm:$0xff]  ;;  %191 = vst [vmem:[#allocation7 + $0x38] sm:$0xff] %v175_v25  ;;  %192 = vst [vmem:[#allocation7 + $0x40] sm:$0xff] %v176_v26  ;;  %v230_v36 = vld [vmem:[#allocation5 + $0xc] ss:$0 sm:$0xff] }
  0x34   :  { %v179_v35 = vadd.f32 %v229_v32, %v67_v33  ;;  %v231_v38 = vld [vmem:[#allocation5 + $0xd] ss:$0 sm:$0xff]  ;;  %v180_v39 = vadd.f32 %v230_v36, %v68_v37  ;;  %v232_v41 = vld [vmem:[#allocation5 + $0xe] ss:$0 sm:$0xff]  ;;  %v70_v42 = vld [vmem:[#allocation2 + $0x70] sm:$0xff]  ;;  %194 = vst [vmem:[#allocation7 + $0x50] sm:$0xff] %v178_v34 }
  0x35   :  { %193 = vst [vmem:[#allocation7 + $0x48] sm:$0xff] %v177_v30  ;;  %v69_v40 = vld [vmem:[#allocation2 + $0x68] sm:$0xff]  ;;  %v182_v44 = vadd.f32 %v232_v41, %v70_v42  ;;  %v71_v46 = vld [vmem:[#allocation2 + $0x78] sm:$0xff] }
  0x36   :  { %195 = vst [vmem:[#allocation7 + $0x58] sm:$0xff] %v179_v35  ;;  %v181_v43 = vadd.f32 %v231_v38, %v69_v40  ;;  %v233_v45 = vld [vmem:[#allocation5 + $0xf] ss:$0 sm:$0xff]  ;;  %196 = vst [vmem:[#allocation7 + $0x60] sm:$0xff] %v180_v39 }
  0x37   :  { %v183_v47 = vadd.f32 %v233_v45, %v71_v46  ;;  %198 = vst [vmem:[#allocation7 + $0x70] sm:$0xff] %v182_v44 }
  0x38   :  { %197 = vst [vmem:[#allocation7 + $0x68] sm:$0xff] %v181_v43 }
  0x39   :  { %199 = vst [vmem:[#allocation7 + $0x78] sm:$0xff] %v183_v47 }
  0x3a   :  { %296 = shalt.err (!%p293_p8)
}
  0x3b   :  { %s297_s15 = scalar_lea.hbm %s382_s2, 2048 }
  0x3c   :  { %p298_p9 = scmp.ne.s32.totalorder %s382_s2, %s297_s15  ;;  %p301_p10 = scmp.lt.u32.totalorder %s297_s15, %s382_s2 }
  0x3e   :  { %p303_p11 = pnand %p301_p10, %p298_p9 }
  0x40   :  { %306 = shalt.err (!%p303_p11)
}
  0x41   :  { %211 = dma.vmem_to_hbm [thread:$0]  %s206_s11, 2048, %s382_s2, [#allocation4], %s314_s19, %s314_s19, %s315_s20  }
  0x42   :  { %311 = dma.done.wait [#allocation4], 2048  }
  0x43   :  { %312 = vsyncadd [#allocation4], 4294965248 }
  0x44   :  { %215 = vsyncpa [#allocation3], 1 }
  0x45   :  { %216 = vsyncpa [#allocation6], 1 }
  0x46   :  { %217 = vsyncpa [#allocation4], 1 }

</bundles_post_ra>
